<compile_context>
chip_gen: v6e
topology: v6e:2x2x1
jax: 0.10.0
libtpu: 0.0.40
codegen_flags: <defaults>
</compile_context>

<pallas_src>
import functools

import jax
import jax.numpy as jnp
from jax.experimental import pallas as pl
from jax.experimental.pallas import tpu as pltpu


def _truncated_loss_kernel(logits_ref, targets_ref, w_ref, out_ref, *,
                           q, k, n_total, use_mxu_reduce):
    s = pl.program_id(0)           # core-split axis (parallel)
    i = pl.program_id(1)           # row-tile axis (arbitrary / reduction)

    @pl.when(i == 0)
    def _():
        out_ref[...] = jnp.zeros_like(out_ref)

    x = logits_ref[...].astype(jnp.float32)                # (TN, C)
    tn, c = x.shape

    # Numerically stable target probability without materializing full softmax:
    #   yg = exp(x_t - m) / sum_j exp(x_j - m)
    m = jnp.max(x, axis=1, keepdims=True)                   # (TN, 1)   XLU
    e = jnp.exp(x - m)                                      # (TN, C)   EUP
    col = jax.lax.broadcasted_iota(jnp.int32, (tn, c), 1)
    e_target = jnp.where(col == targets_ref[...], e, 0.0)   # select (NaN-safe)

    if use_mxu_reduce:
        # Free-slot filler on v7x: per-row sums as (TN,C) @ (C,1) on the MXU.
        ones_col = jnp.ones((c, 1), dtype=jnp.float32)
        sum_e = jnp.dot(e, ones_col, preferred_element_type=jnp.float32)
        e_t = jnp.dot(e_target, ones_col, preferred_element_type=jnp.float32)
    else:
        sum_e = jnp.sum(e, axis=1, keepdims=True)           # (TN, 1)   XLU
        e_t = jnp.sum(e_target, axis=1, keepdims=True)       # (TN, 1)   XLU

    yg = e_t / sum_e                                        # (TN, 1)

    # loss = (1 - yg**q)/q * w - (1 - k**q)/q * w  ==  w * (k**q - yg**q) / q
    k_pow_q = float(k) ** float(q)                          # folded at trace time
    inv_q = 1.0 / float(q)
    w = w_ref[...].astype(jnp.float32)                      # (TN, 1)
    loss_rows = w * ((k_pow_q - jnp.power(yg, q)) * inv_q)

    # Mask rows past N (ragged last tile / clamped duplicate tile).  Keep this
    # a select so garbage rows (possibly Inf/NaN) cannot pollute the sum.
    row0 = (s * pl.num_programs(1) + i) * tn
    rows = row0 + jax.lax.broadcasted_iota(jnp.int32, (tn, 1), 0)
    tile_sum = jnp.sum(jnp.where(rows < n_total, loss_rows, 0.0))

    out_ref[...] += tile_sum


def _tpu_config():
    """Per-generation tile / VMEM budgets (safe fallback if query fails)."""
    vmem_cap = 128 * 1024 * 1024
    try:
        vmem_cap = int(pltpu.get_tpu_info().vmem_capacity_bytes)
    except Exception:
        pass
    if vmem_cap <= 64 * 1024 * 1024:
        # v7x-like: 64 MiB VMEM per TensorCore, 2 TensorCores per chip.
        return dict(target_bytes=4 * 1024 * 1024,
                    vmem_limit=48 * 1024 * 1024,
                    num_splits=2,
                    is_v7x_like=True)
    # v5e / v6e: 128 MiB VMEM, single TensorCore.
    return dict(target_bytes=8 * 1024 * 1024,
                vmem_limit=64 * 1024 * 1024,
                num_splits=1,
                is_v7x_like=False)


def truncated_loss_forward(logits, targets, w, *, q, k,
                           tile_bytes=None, num_splits=None):
    n, c = logits.shape
    itemsize = jnp.dtype(logits.dtype).itemsize
    cfg = _tpu_config()

    target_bytes = tile_bytes if tile_bytes is not None else cfg["target_bytes"]

    # Sublane packing multiple for the logits dtype (f32->8, bf16->16, int8->32).
    sub = max(8, 32 // itemsize)

    # Size the tile by its f32 working-set bytes so that (f32 cast + exp + masked
    # exp ~= 3x target_bytes) + (2x double-buffered native-dtype input) stays
    # within the generation's vmem_limit for any input dtype.
    rows = target_bytes // max(1, c * 4)
    tn = max(sub, (rows // sub) * sub)
    tn = min(tn, ((n + sub - 1) // sub) * sub)   # never larger than the problem

    n_tiles = pl.cdiv(n, tn)
    splits = num_splits if num_splits is not None else cfg["num_splits"]
    splits = splits if n_tiles >= 2 else 1
    tiles_per_split = pl.cdiv(n_tiles, splits)

    # MXU-based row reductions only pay off where the kernel is not purely
    # HBM-bound: v7x-like generations with sub-32-bit logits.
    use_mxu_reduce = bool(cfg["is_v7x_like"] and itemsize < 4)

    kernel = functools.partial(_truncated_loss_kernel, q=q, k=k, n_total=n,
                               use_mxu_reduce=use_mxu_reduce)

    last_tile = n_tiles - 1

    def row_map(s, i):
        # Clamp so a block never lies entirely past the unpadded array when
        # n_tiles is not a multiple of `splits`; the duplicated tile's rows are
        # >= n_total so the in-kernel mask zeroes its contribution.
        return (jnp.minimum(s * tiles_per_split + i, last_tile), 0)

    partials = pl.pallas_call(
        kernel,
        out_shape=jax.ShapeDtypeStruct((splits, 1), jnp.float32),
        grid=(splits, tiles_per_split),
        in_specs=[
            pl.BlockSpec((tn, c), row_map),    # logits tile (native dtype)
            pl.BlockSpec((tn, 1), row_map),    # targets column
            pl.BlockSpec((tn, 1), row_map),    # gathered weights column
        ],
        out_specs=pl.BlockSpec((1, 1), lambda s, i: (s, 0)),
        compiler_params=pltpu.CompilerParams(
            dimension_semantics=("parallel", "arbitrary"),
            vmem_limit_bytes=cfg["vmem_limit"],
        ),
    )(logits,
      targets.astype(jnp.int32).reshape(n, 1),
      w.astype(jnp.float32).reshape(n, 1))

    return jnp.sum(partials) / n


class TruncatedLoss:
    """JAX/Pallas port of the PyTorch TruncatedLoss module (forward only)."""

    def __init__(self, q=0.7, k=0.5, trainset_size=50000):
        self.q = float(q)
        self.k = float(k)
        # non-trainable parameter: ones(trainset_size, 1)
        self.weight = jnp.ones((trainset_size, 1), dtype=jnp.float32)

    def __call__(self, logits, targets, indexes, **kwargs):
        # TODO(synk): the weight-row gather could be folded into the kernel via
        # PrefetchScalarGridSpec; it is O(N) and negligible vs. the logits read.
        w = self.weight[indexes]                      # (N, 1)
        return truncated_loss_forward(logits, targets, w,
                                      q=self.q, k=self.k, **kwargs)


def _reference_loss(logits, targets, w, q, k):
    p = jax.nn.softmax(logits.astype(jnp.float32), axis=1)
    yg = jnp.take_along_axis(p, targets[:, None], axis=1)
    loss = (1.0 - yg**q) / q * w - (1.0 - k**q) / q * w
    return jnp.mean(loss)


if __name__ == "__main__":
    key = jax.random.PRNGKey(0)
    TRAINSET = 256
    loss_mod = TruncatedLoss(q=0.7, k=0.5, trainset_size=TRAINSET)

    # --- small case (single tile) ---
    k1, k2, k3, key = jax.random.split(key, 4)
    N, C = 8, 32
    logits = jax.random.normal(k1, (N, C), dtype=jnp.float32)
    targets = jax.random.randint(k2, (N,), 0, C, dtype=jnp.int32)
    indexes = jax.random.randint(k3, (N,), 0, TRAINSET, dtype=jnp.int32)
    loss = loss_mod(logits, targets, indexes)
    jax.block_until_ready(loss)
    ref = _reference_loss(logits, targets, loss_mod.weight[indexes], 0.7, 0.5)
    assert jnp.allclose(loss, ref, atol=1e-5, rtol=1e-5), (loss, ref)

    # --- ragged N, forced multi-tile + 2-way split with odd tile count:
    #     exercises the ragged last tile and the clamped (fully-OOB) tile ---
    k1, k2, k3, key = jax.random.split(key, 4)
    N2, C2 = 1037, 160
    logits2 = jax.random.normal(k1, (N2, C2), dtype=jnp.float32)
    targets2 = jax.random.randint(k2, (N2,), 0, C2, dtype=jnp.int32)
    indexes2 = jax.random.randint(k3, (N2,), 0, TRAINSET, dtype=jnp.int32)
    loss2 = loss_mod(logits2, targets2, indexes2,
                     tile_bytes=64 * 1024, num_splits=2)
    jax.block_until_ready(loss2)
    ref2 = _reference_loss(logits2, targets2, loss_mod.weight[indexes2], 0.7, 0.5)
    assert jnp.allclose(loss2, ref2, atol=1e-5, rtol=1e-5), (loss2, ref2)

    # --- same data with automatic per-generation tiling / splits ---
    loss2b = loss_mod(logits2, targets2, indexes2)
    jax.block_until_ready(loss2b)
    assert jnp.allclose(loss2b, ref2, atol=1e-5, rtol=1e-5), (loss2b, ref2)

    # --- bf16 logits: native-dtype DMA, sublane-16 tile rounding, multi-tile ---
    k1, k2, k3, key = jax.random.split(key, 4)
    N3, C3 = 300, 96
    logits3 = jax.random.normal(k1, (N3, C3), dtype=jnp.float32).astype(jnp.bfloat16)
    targets3 = jax.random.randint(k2, (N3,), 0, C3, dtype=jnp.int32)
    indexes3 = jax.random.randint(k3, (N3,), 0, TRAINSET, dtype=jnp.int32)
    loss3 = loss_mod(logits3, targets3, indexes3,
                     tile_bytes=16 * 1024, num_splits=2)
    jax.block_until_ready(loss3)
    ref3 = _reference_loss(logits3, targets3, loss_mod.weight[indexes3], 0.7, 0.5)
    assert jnp.allclose(loss3, ref3, atol=1e-5, rtol=1e-5), (loss3, ref3)

    print("KERNEL_OK")
</pallas_src>

<mosaic_0001>
module attributes {stable_mosaic.version = 11 : i64} {
  func.func @_truncated_loss_kernel(%arg0: i32, %arg1: i32, %arg2: memref<8x32xf32, #tpu.memory_space<vmem>>, %arg3: memref<8x1xi32, #tpu.memory_space<vmem>>, %arg4: memref<8x1xf32, #tpu.memory_space<vmem>>, %arg5: memref<1x1xf32, #tpu.memory_space<vmem>>) attributes {dimension_semantics = [#tpu.dimension_semantics<parallel>, #tpu.dimension_semantics<arbitrary>], iteration_bounds = array<i64: 1, 1>, scalar_prefetch = 0 : i64, scratch_operands = 0 : i64, tpu.core_type = #tpu.core_type<tc>, window_params = [{transform_indices = @transform_0, window_bounds = array<i64: 8, 32>}, {transform_indices = @transform_1, window_bounds = array<i64: 8, 1>}, {transform_indices = @transform_2, window_bounds = array<i64: 8, 1>}, {transform_indices = @transform_3, window_bounds = array<i64: 1, 1>}]} {
    %c0_i32 = arith.constant 0 : i32
    %0 = arith.cmpi eq, %arg1, %c0_i32 : i32
    %1 = arith.extui %0 : i1 to i32
    %c0_i32_0 = arith.constant 0 : i32
    %2 = arith.cmpi ne, %1, %c0_i32_0 : i32
    scf.if %2 {
      %cst_19 = arith.constant 0.000000e+00 : f32
      %46 = vector.broadcast %cst_19 : f32 to vector<1x1xf32>
      %c0_20 = arith.constant 0 : index
      %c0_21 = arith.constant 0 : index
      %47 = vector.load %arg5[%c0_20, %c0_21] : memref<1x1xf32, #tpu.memory_space<vmem>>, vector<1x1xf32>
      tpu.vector_store %arg5[%c0_20, %c0_21], %46 {strides = array<i32>} : memref<1x1xf32, #tpu.memory_space<vmem>>, vector<1x1xf32>,
    } else {
    }
    %c0 = arith.constant 0 : index
    %c0_1 = arith.constant 0 : index
    %3 = vector.load %arg2[%c0, %c0_1] : memref<8x32xf32, #tpu.memory_space<vmem>>, vector<8x32xf32>
    %cst = arith.constant dense<0xFF800000> : vector<8xf32>
    %4 = vector.multi_reduction <maximumf>, %3, %cst [1] : vector<8x32xf32> to vector<8xf32>
    %5 = vector.shape_cast %4 : vector<8xf32> to vector<8x1xf32>
    %6 = vector.broadcast %5 : vector<8x1xf32> to vector<8x32xf32>
    %7 = arith.subf %3, %6 : vector<8x32xf32>
    %8 = math.exp %7 : vector<8x32xf32>
    %9 = tpu.iota {dimensions = array<i32: 1>} : vector<8x32xi32>
    %c0_2 = arith.constant 0 : index
    %c0_3 = arith.constant 0 : index
    %10 = vector.load %arg3[%c0_2, %c0_3] : memref<8x1xi32, #tpu.memory_space<vmem>>, vector<8x1xi32>
    %11 = vector.broadcast %10 : vector<8x1xi32> to vector<8x32xi32>
    %12 = arith.cmpi eq, %9, %11 : vector<8x32xi32>
    %cst_4 = arith.constant 0.000000e+00 : f32
    %13 = vector.broadcast %cst_4 : f32 to vector<8x32xf32>
    %14 = arith.select %12, %8, %13 : vector<8x32xi1>, vector<8x32xf32>
    %cst_5 = arith.constant dense<0.000000e+00> : vector<8xf32>
    %15 = vector.multi_reduction <add>, %8, %cst_5 [1] : vector<8x32xf32> to vector<8xf32>
    %16 = vector.shape_cast %15 : vector<8xf32> to vector<8x1xf32>
    %cst_6 = arith.constant dense<0.000000e+00> : vector<8xf32>
    %17 = vector.multi_reduction <add>, %14, %cst_6 [1] : vector<8x32xf32> to vector<8xf32>
    %18 = vector.shape_cast %17 : vector<8xf32> to vector<8x1xf32>
    %19 = arith.divf %18, %16 : vector<8x1xf32>
    %c0_7 = arith.constant 0 : index
    %c0_8 = arith.constant 0 : index
    %20 = vector.load %arg4[%c0_7, %c0_8] : memref<8x1xf32, #tpu.memory_space<vmem>>, vector<8x1xf32>
    %cst_9 = arith.constant 0.699999988 : f32
    %21 = vector.broadcast %cst_9 : f32 to vector<8x1xf32>
    %22 = math.powf %19, %21 : vector<8x1xf32>
    %cst_10 = arith.constant 0.615572214 : f32
    %23 = vector.broadcast %cst_10 : f32 to vector<8x1xf32>
    %24 = arith.subf %23, %22 : vector<8x1xf32>
    %cst_11 = arith.constant 1.42857146 : f32
    %25 = vector.broadcast %cst_11 : f32 to vector<8x1xf32>
    %26 = arith.mulf %24, %25 : vector<8x1xf32>
    %27 = arith.mulf %20, %26 : vector<8x1xf32>
    %c1_i32 = arith.constant 1 : i32
    %28 = arith.muli %arg0, %c1_i32 : i32
    %29 = arith.addi %28, %arg1 : i32
    %c8_i32 = arith.constant 8 : i32
    %30 = arith.muli %29, %c8_i32 : i32
    %31 = tpu.iota {dimensions = array<i32: 0>} : vector<8x1xi32>
    %32 = vector.broadcast %30 : i32 to vector<8x1xi32>
    %33 = arith.addi %32, %31 : vector<8x1xi32>
    %c8_i32_12 = arith.constant 8 : i32
    %34 = vector.broadcast %c8_i32_12 : i32 to vector<8x1xi32>
    %35 = arith.cmpi slt, %33, %34 : vector<8x1xi32>
    %cst_13 = arith.constant 0.000000e+00 : f32
    %36 = vector.broadcast %cst_13 : f32 to vector<8x1xf32>
    %37 = arith.select %35, %27, %36 : vector<8x1xi1>, vector<8x1xf32>
    %38 = vector.shape_cast %37 : vector<8x1xf32> to vector<1x8x1xf32>
    %cst_14 = arith.constant dense<0.000000e+00> : vector<1xf32>
    %39 = vector.multi_reduction <add>, %38, %cst_14 [1, 2] : vector<1x8x1xf32> to vector<1xf32>
    %40 = vector.shape_cast %39 : vector<1xf32> to vector<1x1x1xf32>
    %41 = vector.extract %40[0, 0, 0] : f32 from vector<1x1x1xf32>
    %c0_15 = arith.constant 0 : index
    %c0_16 = arith.constant 0 : index
    %42 = vector.load %arg5[%c0_15, %c0_16] : memref<1x1xf32, #tpu.memory_space<vmem>>, vector<1x1xf32>
    %43 = vector.broadcast %41 : f32 to vector<1x1xf32>
    %44 = arith.addf %42, %43 : vector<1x1xf32>
    %c0_17 = arith.constant 0 : index
    %c0_18 = arith.constant 0 : index
    %45 = vector.load %arg5[%c0_17, %c0_18] : memref<1x1xf32, #tpu.memory_space<vmem>>, vector<1x1xf32>
    tpu.vector_store %arg5[%c0_17, %c0_18], %44 {strides = array<i32>} : memref<1x1xf32, #tpu.memory_space<vmem>>, vector<1x1xf32>,
    return
  }
  func.func @transform_0(%arg0: i32, %arg1: i32) -> (i32, i32) {
    %c1_i32 = arith.constant 1 : i32
    %0 = arith.muli %arg0, %c1_i32 : i32
    %1 = arith.addi %0, %arg1 : i32
    %c0_i32 = arith.constant 0 : i32
    %2 = arith.minsi %1, %c0_i32 : i32
    %c0_i32_0 = arith.constant 0 : i32
    %c0_i32_1 = arith.constant 0 : i32
    return %2, %c0_i32_0 : i32, i32
  }
  func.func @transform_1(%arg0: i32, %arg1: i32) -> (i32, i32) {
    %c1_i32 = arith.constant 1 : i32
    %0 = arith.muli %arg0, %c1_i32 : i32
    %1 = arith.addi %0, %arg1 : i32
    %c0_i32 = arith.constant 0 : i32
    %2 = arith.minsi %1, %c0_i32 : i32
    %c0_i32_0 = arith.constant 0 : i32
    %c0_i32_1 = arith.constant 0 : i32
    return %2, %c0_i32_0 : i32, i32
  }
  func.func @transform_2(%arg0: i32, %arg1: i32) -> (i32, i32) {
    %c1_i32 = arith.constant 1 : i32
    %0 = arith.muli %arg0, %c1_i32 : i32
    %1 = arith.addi %0, %arg1 : i32
    %c0_i32 = arith.constant 0 : i32
    %2 = arith.minsi %1, %c0_i32 : i32
    %c0_i32_0 = arith.constant 0 : i32
    %c0_i32_1 = arith.constant 0 : i32
    return %2, %c0_i32_0 : i32, i32
  }
  func.func @transform_3(%arg0: i32, %arg1: i32) -> (i32, i32) {
    %c0_i32 = arith.constant 0 : i32
    %c0_i32_0 = arith.constant 0 : i32
    return %arg0, %c0_i32 : i32, i32
  }
}

</mosaic_0001>

<bundles_post_ra>
// kernel: tpu_custom_call.1
= control target key start
LH: loop header
LB: loop body
LE: loop exit
PB: predicated region body
PF: predicated region fallthrough
CT: control target
= control target key end

     0   :  { %vm103_vm0 = vcmask 261120   ;;  %s289_s0 = inlined_call_operand.vmem [shape: f32[8,32], index: 0, kind: input, shape index: {}]   ;;  %s290_s1 = inlined_call_operand.vmem [shape: s32[8,1], index: 1, kind: input, shape index: {}]   ;;  %s291_s2 = inlined_call_operand.vmem [shape: f32[8,1], index: 2, kind: input, shape index: {}]   ;;  %s292_s3 = inlined_call_operand.hbm [shape: f32[1,1], index: 3, kind: output, shape index: {}]  }
   0x1   :  { %v102_v0 = vld [vmem:[%s289_s0] sm:$0xff] }
   0x2   :  { %8 = vsyncpa [#allocation3], 0  ;;  %v104_v1 = vsel %vm103_vm0, %v102_v0, -inf  ;;  %v249_v2 = vmov 0   ;;  %v112_v3 = vld [vmem:[%s290_s1] sm:$0xff]  ;;  %v110_v7 = vlaneseq  ;;  %vm139_vm7 = vcmask 7168  }
   0x3   :  { %218 = vset.pattern.permute.xlu0 %v249_v2  ;;  %v126_v28 = vld [vmem:[%s291_s2] sm:$0xff]  ;;  %vm100_vm8 = vcmask 0   ;;  %v250_v32 = vmov 0.0   ;;  %s251_s16 = smov [#allocation2]  }
   0x4   :  { %105 = vmax.xlane.f32.xlu0 %v104_v1  ;;  %v111_v8 = vand.u32 127, %v110_v7  ;;  %101 = vst.msk [vmem:[#allocation2] sm:$0x1] %vm100_vm8, %v250_v32  ;;  %s161_s2 = sshll.u32 %s251_s16, 4  ;;  %s162_s2 = int_to_ptr.vmem [resolvable:$true] %s161_s2 }
   0x5   :  { %s227_s18 = scalar_lea.vmem %s162_s2, 16  ;;  %s231_s19 = scalar_lea.vmem %s162_s2, 32 }
   0x6   :  { %p228_p0 = scmp.ne.s32.totalorder %s162_s2, %s227_s18  ;;  %p232_p1 = scmp.lt.s32.totalorder %s162_s2, %s162_s2 }
   0x7   :  { %p233_p2 = scmp.lt.s32.totalorder %s231_s19, %s227_s18 }
   0x9   :  { %p234_p3 = por %p233_p2, %p232_p1 }
   0xb   :  { %v150_v40 = vld [vmem:[#allocation2] sm:$0x1]  ;;  %p235_p4 = pnand %p234_p3, %p228_p0 }
  0x1a   :  { %114 = vperm.xlu0 %218, %v112_v3  }
  0x8d   :  { %v106_v4 = vpop.xlane.xlu0 %105 }
  0x8e   :  { %v107_v5 = vsub.f32 %v102_v0, %v106_v4 }
  0x90   :  { %v108_v6 = vmul.f32 1.442695, %v107_v5 }
  0x92   :  { %219 = vpow2.f32 %v108_v6 }
  0x95   :  { %v115_v9 = vpop.permute.xlu0 %114 }
  0x96   :  { %vm116_vm1 = vcmp.eq.s32.totalorder %v111_v8, %v115_v9 }
  0x9f   :  { %v220_v10 = vpop.eup %219 }
  0xa0   :  { %v118_v11 = vsel %vm103_vm0, %v220_v10, 0.0  ;;  %v117_v12 = vsel %vm116_vm1, %v220_v10, 0.0 }
  0xa1   :  { %119 = vadd.xlane.f32.xlu1 %v118_v11  ;;  %v121_v13 = vsel %vm103_vm0, %v117_v12, 0.0 }
  0xa5   :  { %122 = vadd.xlane.f32.xlu1 %v121_v13 }
 0x12a   :  { %v120_v14 = vpop.xlane.xlu1 %119 }
 0x12b   :  { %221 = vrcp.f32 %v120_v14 }
 0x12e   :  { %v123_v16 = vpop.xlane.xlu1 %122 }
 0x138   :  { %v222_v15 = vpop.eup %221 }
 0x139   :  { %v125_v17 = vmul.f32 %v222_v15, %v123_v16 }
 0x13b   :  { %v191_v18 = vand.u32 2147483647, %v125_v17  ;;  %vm195_vm2 = vcmp.lt.f32.partialorder %v125_v17, 0  ;;  %vm196_vm3 = vcmp.eq.f32.partialorder %v125_v17, 0  ;;  %vm208_vm5 = vcmp.ne.f32.partialorder %v125_v17, %v125_v17 }
 0x13c   :  { %vm197_vm6 = vcmp.eq.f32.partialorder %v125_v17, 1065353216 }
 0x13d   :  { %223 = vlog2.f32 %v191_v18  ;;  %vm200_vm4 = vcmp.eq.f32.partialorder %v191_v18, 2139095040 }
 0x14a   :  { %v224_v19 = vpop.eup %223 }
 0x14b   :  { %v193_v20 = vmul.f32 0.7, %v224_v19 }
 0x14d   :  { %225 = vpow2.f32 %v193_v20 }
 0x15a   :  { %v226_v21 = vpop.eup %225 }
 0x15b   :  { %v201_v22 = vsel %vm195_vm2, 2143289344, %v226_v21 }
 0x15c   :  { %v202_v23 = vsel %vm196_vm3, 0, %v201_v22 }
 0x15d   :  { %v207_v24 = vsel %vm200_vm4, 2139095040, %v202_v23 }
 0x15e   :  { %v211_v25 = vsel %vm208_vm5, 2143289344, %v207_v24 }
 0x15f   :  { %v212_v26 = vsel %vm197_vm6, 1065353216, %v211_v25 }
 0x160   :  { %v128_v27 = vsub.f32 0.6155722, %v212_v26 }
 0x162   :  { %v129_v29 = vmul.f32 1.4285715, %v128_v27 }
 0x164   :  { %v130_v30 = vmul.f32 %v129_v29, %v126_v28 }
 0x166   :  { %v140_v31 = vsel %vm139_vm7, %v130_v30, 0.0 }
 0x167   :  { %141 = vadd.xlane.f32.xlu1 %v140_v31 }
 0x1f0   :  { %v142_v33 = vpop.xlane.xlu1 %141 }
 0x1f1   :  { %v143_v34 = vrot.slane %v142_v33, 4 }
 0x1f3   :  { %v144_v35 = vadd.f32 %v143_v34, %v142_v33 }
 0x1f5   :  { %v145_v36 = vrot.slane %v144_v35, 2 }
 0x1f7   :  { %v146_v37 = vadd.f32 %v145_v36, %v144_v35 }
 0x1f9   :  { %v147_v38 = vrot.slane %v146_v37, 1 }
 0x1fb   :  { %v148_v39 = vadd.f32 %v147_v38, %v146_v37 }
 0x1fd   :  { %213 = vpush %v148_v39 }
 0x22e   :  { %s214_s17 = spop %213 }
 0x22f   :  { %v151_v41 = vstv %s214_s17 }
 0x230   :  { %v152_v42 = vadd.f32 %v151_v41, %v150_v40 }
 0x232   :  { %154 = vst.msk [vmem:[#allocation2] sm:$0x1] %vm100_vm8, %v152_v42 }
 0x233   :  { %238 = shalt.err (!%p235_p4)
}
 0x234   :  { %164 = dma.vmem_to_hbm [thread:$0]  %s162_s2, 16, %s292_s3, [#allocation3]  }
 0x235   :  { %247 = dma.done.wait [#allocation3], 16  }
 0x236   :  { %248 = vsyncadd [#allocation3], 4294967280 }
 0x237   :  { %168 = vsyncpa [#allocation3], 1 }

</bundles_post_ra>
